<compile_context>
chip_gen: v7x
topology: tpu7x:2x2x1
jax: 0.10.0
libtpu: 0.0.40
codegen_flags: <defaults>
</compile_context>

<pallas_src>
import math

import jax
import jax.numpy as jnp
from jax.experimental import pallas as pl
from jax.experimental.pallas import tpu as pltpu


def _make_attention_kernel(Hb, dkv, with_mask, return_weights, cast_bf16):
    """One grid step = one (batch, head-block)."""

    def kernel(*refs):
        idx = 0
        hs_ref = refs[idx]; idx += 1
        wq_ref = refs[idx]; idx += 1
        wk_ref = refs[idx]; idx += 1
        wv_ref = refs[idx]; idx += 1
        wo_ref = refs[idx]; idx += 1
        bias_ref = refs[idx]; idx += 1
        if with_mask:
            mask_ref = refs[idx]; idx += 1
        out_ref = refs[idx]; idx += 1
        if return_weights:
            attnw_ref = refs[idx]; idx += 1
        acc_ref = refs[idx]

        hb = pl.program_id(1)

        @pl.when(hb == 0)
        def _():
            acc_ref[...] = jnp.zeros_like(acc_ref)

        hs = hs_ref[0]                                                   # (S, D)

        # Block-wide projections (N = Hb*dkv fills the MXU better than dkv).
        # Scale 1/sqrt(dkv) is already folded into wq in the wrapper.
        q_blk = jnp.dot(hs, wq_ref[hb], preferred_element_type=jnp.float32)
        k_blk = jnp.dot(hs, wk_ref[hb], preferred_element_type=jnp.float32)
        v_blk = jnp.dot(hs, wv_ref[hb], preferred_element_type=jnp.float32)

        if cast_bf16:
            q_blk = q_blk.astype(jnp.bfloat16)
            k_blk = k_blk.astype(jnp.bfloat16)
            v_blk = v_blk.astype(jnp.bfloat16)

        if with_mask:
            add_mask = mask_ref[0]                          # (1, S) additive, f32

        ctx_parts = []
        for i in range(Hb):                                 # short unrolled loop
            lo, hi = i * dkv, (i + 1) * dkv
            q_h = q_blk[:, lo:hi]
            k_h = k_blk[:, lo:hi]
            v_h = v_blk[:, lo:hi]

            # scores = (q / sqrt(dkv)) @ k^T + rel-pos bias (+ additive mask)
            scores = jax.lax.dot_general(
                q_h, k_h, (((1,), (1,)), ((), ())),
                preferred_element_type=jnp.float32)         # (S, S) f32
            scores = scores + bias_ref[hb * Hb + i]
            if with_mask:
                scores = scores + add_mask

            # Numerically stable softmax in f32; row reciprocal on the EUP.
            m = jnp.max(scores, axis=-1, keepdims=True)
            e = jnp.exp(scores - m)
            s = jnp.sum(e, axis=-1, keepdims=True)
            inv = pl.reciprocal(s, approx=False)            # (S, 1)

            if return_weights:
                w = e * inv                                  # (S, S)
                attnw_ref[0, i] = w.astype(attnw_ref.dtype)
                p = w.astype(v_h.dtype) if cast_bf16 else w
                ctx_h = jnp.dot(p, v_h, preferred_element_type=jnp.float32)
            else:
                # Deferred normalization: scale the (S, dkv) context, not the
                # (S, S) weights.
                p = e.astype(v_h.dtype) if cast_bf16 else e
                ctx_h = jnp.dot(p, v_h, preferred_element_type=jnp.float32) * inv
            ctx_parts.append(ctx_h)

        ctx_blk = ctx_parts[0] if Hb == 1 else jnp.concatenate(ctx_parts, axis=-1)
        if cast_bf16:
            ctx_blk = ctx_blk.astype(jnp.bfloat16)

        # Head-block slice of the output projection, accumulated over blocks.
        acc_ref[...] += jnp.dot(ctx_blk, wo_ref[hb],
                                preferred_element_type=jnp.float32)      # (S, D)

        @pl.when(hb == pl.num_programs(1) - 1)
        def _():
            out_ref[0] = acc_ref[...].astype(out_ref.dtype)

    return kernel


def _pick_head_block(H, dkv):
    """Largest divisor of H whose block width Hb*dkv stays a sane MXU tile."""
    best = 1
    for cand in range(1, H + 1):
        if H % cand == 0 and cand * dkv <= 512:
            best = cand
    return best


def enhanced_self_attention(hidden_states, wq, wk, wv, wo, rel_emb,
                            attention_mask=None, *,
                            return_attn_weights=True, head_block=None):
    """Pallas implementation of EnhancedSelfAttention.forward (inference).

    hidden_states: (B, S, D)
    wq, wk, wv:    (D, H*dkv)   (math layout, i.e. x @ W)
    wo:            (H*dkv, D)
    rel_emb:       (32, H)      relative_attention_bias embedding table
    attention_mask: optional (B, S); 0 = masked key position.

    Returns (output, attn_weights) when return_attn_weights=True (module
    semantics), otherwise just the output (skips the (B, H, S, S) writeback).
    """
    B, S, D = hidden_states.shape
    H = rel_emb.shape[1]
    dkv = wq.shape[1] // H
    dtype = hidden_states.dtype
    scale = 1.0 / math.sqrt(dkv)

    Hb = head_block if head_block is not None else _pick_head_block(H, dkv)
    assert H % Hb == 0
    HB = H // Hb

    # Head-block weight layout; 1/sqrt(dkv) folded into wq.
    wq_b = (wq * scale).reshape(D, HB, Hb * dkv).transpose(1, 0, 2)   # (HB, D, Hb*dkv)
    wk_b = wk.reshape(D, HB, Hb * dkv).transpose(1, 0, 2)             # (HB, D, Hb*dkv)
    wv_b = wv.reshape(D, HB, Hb * dkv).transpose(1, 0, 2)             # (HB, D, Hb*dkv)
    wo_b = wo.reshape(HB, Hb * dkv, D)                                # (HB, Hb*dkv, D)

    # Relative-position bias (tiny gather, once in the wrapper, VMEM-resident).
    pos = jnp.arange(S)
    rel = jnp.clip(pos[:, None] - pos[None, :], -16, 16) + 16          # (S, S)
    bias = jnp.transpose(rel_emb[rel], (2, 0, 1)).astype(jnp.float32)  # (H, S, S)

    with_mask = attention_mask is not None
    cast_bf16 = (dtype == jnp.bfloat16)
    kernel = _make_attention_kernel(Hb, dkv, with_mask, return_attn_weights,
                                    cast_bf16)

    const3 = lambda b, hb: (0, 0, 0)
    in_arrays = [hidden_states, wq_b, wk_b, wv_b, wo_b, bias]
    in_specs = [
        pl.BlockSpec((1, S, D), lambda b, hb: (b, 0, 0)),
        pl.BlockSpec((HB, D, Hb * dkv), const3),     # resident (fetched once)
        pl.BlockSpec((HB, D, Hb * dkv), const3),     # resident
        pl.BlockSpec((HB, D, Hb * dkv), const3),     # resident
        pl.BlockSpec((HB, Hb * dkv, D), const3),     # resident
        pl.BlockSpec((H, S, S), const3),             # resident f32 bias
    ]
    if with_mask:
        # Additive mask: 0 where allowed, -1e9 where masked.
        add_mask = ((attention_mask.astype(jnp.float32) - 1.0) * 1e9
                    ).reshape(B, 1, S)
        in_arrays.append(add_mask)
        in_specs.append(pl.BlockSpec((1, 1, S), lambda b, hb: (b, 0, 0)))

    out_shapes = [jax.ShapeDtypeStruct((B, S, D), dtype)]
    out_specs = [pl.BlockSpec((1, S, D), lambda b, hb: (b, 0, 0))]
    if return_attn_weights:
        out_shapes.append(jax.ShapeDtypeStruct((B, H, S, S), dtype))
        out_specs.append(pl.BlockSpec((1, Hb, S, S), lambda b, hb: (b, hb, 0, 0)))

    elem = jnp.dtype(dtype).itemsize
    flops = B * H * (8 * S * D * dkv + 4 * S * S * dkv)
    bytes_accessed = (elem * 2 * B * S * D                 # hidden in + out
                      + elem * 4 * H * D * dkv             # weights, fetched once
                      + 4 * H * S * S                      # bias, fetched once
                      + (4 * B * S if with_mask else 0)
                      + (elem * B * H * S * S if return_attn_weights else 0))
    cost = pl.CostEstimate(flops=flops,
                           transcendentals=B * H * S * S,
                           bytes_accessed=bytes_accessed)

    # Explicit VMEM budget: resident arrays + double-buffered per-step blocks
    # + f32 accumulator scratch, with headroom.
    resident = (4 * H * D * dkv) * elem + 4 * H * S * S
    per_step = (S * D * elem                                # hs block
                + S * D * elem                              # out block
                + (Hb * S * S * elem if return_attn_weights else 0)
                + (4 * S if with_mask else 0))
    vmem_limit = int(2 * resident + 2 * per_step + 4 * S * D + (8 << 20))
    vmem_limit = min(max(vmem_limit, 16 << 20), 64 << 20)

    results = pl.pallas_call(
        kernel,
        out_shape=tuple(out_shapes),
        grid_spec=pltpu.PrefetchScalarGridSpec(
            num_scalar_prefetch=0,
            grid=(B, HB),
            in_specs=in_specs,
            out_specs=out_specs,
            scratch_shapes=[pltpu.VMEM((S, D), jnp.float32)],
        ),
        compiler_params=pltpu.CompilerParams(
            dimension_semantics=("parallel", "arbitrary"),
            vmem_limit_bytes=vmem_limit),
        cost_estimate=cost,
    )(*in_arrays)

    if return_attn_weights:
        return results[0], results[1]
    return results[0]


def _reference(hs, wq, wk, wv, wo, rel_emb, mask=None):
    """Pure-JAX replica of the PyTorch forward (dropout = identity)."""
    B, S, D = hs.shape
    H = rel_emb.shape[1]
    dkv = wq.shape[1] // H
    hi = jax.lax.Precision.HIGHEST
    q = jnp.matmul(hs, wq, precision=hi).reshape(B, S, H, dkv).transpose(0, 2, 1, 3)
    k = jnp.matmul(hs, wk, precision=hi).reshape(B, S, H, dkv).transpose(0, 2, 1, 3)
    v = jnp.matmul(hs, wv, precision=hi).reshape(B, S, H, dkv).transpose(0, 2, 1, 3)
    scores = jnp.einsum("bhqd,bhkd->bhqk", q, k, precision=hi) / math.sqrt(dkv)
    pos = jnp.arange(S)
    rel = jnp.clip(pos[:, None] - pos[None, :], -16, 16) + 16
    bias = jnp.transpose(rel_emb[rel], (2, 0, 1))[None]            # (1, H, S, S)
    scores = scores + bias
    if mask is not None:
        scores = jnp.where(mask[:, None, None, :] == 0, -1e9, scores)
    w = jax.nn.softmax(scores, axis=-1)
    ctx = jnp.einsum("bhqk,bhkd->bhqd", w, v, precision=hi)
    ctx = ctx.transpose(0, 2, 1, 3).reshape(B, S, H * dkv)
    out = jnp.matmul(ctx, wo, precision=hi)
    return out, w


if __name__ == "__main__":
    # Small deterministic shapes: batch=2, heads=4, seq=8, d_model=32, d_kv=8.
    B, H, S, D, DKV = 2, 4, 8, 32, 8
    key = jax.random.PRNGKey(0)
    k1, k2, k3, k4, k5, k6 = jax.random.split(key, 6)

    hidden_states = jax.random.normal(k1, (B, S, D), dtype=jnp.float32)
    wq = jax.random.normal(k2, (D, H * DKV), dtype=jnp.float32) * 0.1
    wk = jax.random.normal(k3, (D, H * DKV), dtype=jnp.float32) * 0.1
    wv = jax.random.normal(k4, (D, H * DKV), dtype=jnp.float32) * 0.1
    wo = jax.random.normal(k5, (H * DKV, D), dtype=jnp.float32) * 0.1
    rel_emb = jax.random.normal(k6, (32, H), dtype=jnp.float32) * 0.1

    attention_mask = jnp.ones((B, S), dtype=jnp.float32)
    attention_mask = attention_mask.at[1, -3:].set(0.0)

    # Case 1: no attention mask, attention weights returned (module semantics).
    out0, w0 = enhanced_self_attention(hidden_states, wq, wk, wv, wo, rel_emb, None)
    jax.block_until_ready((out0, w0))
    ref_out0, ref_w0 = _reference(hidden_states, wq, wk, wv, wo, rel_emb, None)
    assert float(jnp.max(jnp.abs(out0 - ref_out0))) < 1e-3, "output mismatch (no mask)"
    assert float(jnp.max(jnp.abs(w0 - ref_w0))) < 1e-4, "attn weights mismatch (no mask)"

    # Case 2: with attention mask, attention weights returned.
    out1, w1 = enhanced_self_attention(hidden_states, wq, wk, wv, wo, rel_emb,
                                       attention_mask)
    jax.block_until_ready((out1, w1))
    ref_out1, ref_w1 = _reference(hidden_states, wq, wk, wv, wo, rel_emb,
                                  attention_mask)
    assert float(jnp.max(jnp.abs(out1 - ref_out1))) < 1e-3, "output mismatch (mask)"
    assert float(jnp.max(jnp.abs(w1 - ref_w1))) < 1e-4, "attn weights mismatch (mask)"

    # Case 3: fast path with the attention-weights output dropped
    # (deferred normalization, no (B,H,S,S) HBM writeback).
    out2 = enhanced_self_attention(hidden_states, wq, wk, wv, wo, rel_emb,
                                   attention_mask, return_attn_weights=False)
    jax.block_until_ready(out2)
    assert float(jnp.max(jnp.abs(out2 - ref_out1))) < 1e-3, "output mismatch (no-weights path)"

    print("KERNEL_OK")
</pallas_src>

<mosaic_0001>
module attributes {stable_mosaic.version = 11 : i64} {
  func.func @kernel(%arg0: i32, %arg1: i32, %arg2: memref<1x8x32xf32, #tpu.memory_space<vmem>>, %arg3: memref<1x32x32xf32, #tpu.memory_space<vmem>>, %arg4: memref<1x32x32xf32, #tpu.memory_space<vmem>>, %arg5: memref<1x32x32xf32, #tpu.memory_space<vmem>>, %arg6: memref<1x32x32xf32, #tpu.memory_space<vmem>>, %arg7: memref<4x8x8xf32, #tpu.memory_space<vmem>>, %arg8: memref<1x8x32xf32, #tpu.memory_space<vmem>>, %arg9: memref<1x4x8x8xf32, #tpu.memory_space<vmem>>, %arg10: memref<8x32xf32, #tpu.memory_space<vmem>>) attributes {dimension_semantics = [#tpu.dimension_semantics<parallel>, #tpu.dimension_semantics<arbitrary>], iteration_bounds = array<i64: 2, 1>, scalar_prefetch = 0 : i64, scratch_operands = 1 : i64, tpu.core_type = #tpu.core_type<tc>, window_params = [{transform_indices = @transform_0, window_bounds = array<i64: 1, 8, 32>}, {pipeline_mode = #tpu.pipeline_mode<synchronous>, transform_indices = @transform_1, window_bounds = array<i64: 1, 32, 32>}, {pipeline_mode = #tpu.pipeline_mode<synchronous>, transform_indices = @transform_2, window_bounds = array<i64: 1, 32, 32>}, {pipeline_mode = #tpu.pipeline_mode<synchronous>, transform_indices = @transform_3, window_bounds = array<i64: 1, 32, 32>}, {pipeline_mode = #tpu.pipeline_mode<synchronous>, transform_indices = @transform_4, window_bounds = array<i64: 1, 32, 32>}, {pipeline_mode = #tpu.pipeline_mode<synchronous>, transform_indices = @transform_5, window_bounds = array<i64: 4, 8, 8>}, {transform_indices = @transform_6, window_bounds = array<i64: 1, 8, 32>}, {transform_indices = @transform_7, window_bounds = array<i64: 1, 4, 8, 8>}]} {
    %c0_i32 = arith.constant 0 : i32
    %0 = arith.cmpi eq, %arg1, %c0_i32 : i32
    %1 = arith.extui %0 : i1 to i32
    %c0_i32_0 = arith.constant 0 : i32
    %2 = arith.cmpi ne, %1, %c0_i32_0 : i32
    scf.if %2 {
      %cst_61 = arith.constant 0.000000e+00 : f32
      %124 = vector.broadcast %cst_61 : f32 to vector<8x32xf32>
      %c0_62 = arith.constant 0 : index
      %c0_63 = arith.constant 0 : index
      %125 = vector.load %arg10[%c0_62, %c0_63] : memref<8x32xf32, #tpu.memory_space<vmem>>, vector<8x32xf32>
      tpu.vector_store %arg10[%c0_62, %c0_63], %124 {strides = array<i32>} : memref<8x32xf32, #tpu.memory_space<vmem>>, vector<8x32xf32>,
    } else {
    }
    %c0 = arith.constant 0 : index
    %c0_1 = arith.constant 0 : index
    %c0_2 = arith.constant 0 : index
    %3 = vector.load %arg2[%c0, %c0_1, %c0_2] : memref<1x8x32xf32, #tpu.memory_space<vmem>>, vector<1x8x32xf32>
    %4 = vector.shape_cast %3 : vector<1x8x32xf32> to vector<8x32xf32>
    %5 = arith.index_cast %arg1 : i32 to index
    %c0_3 = arith.constant 0 : index
    %c0_4 = arith.constant 0 : index
    %6 = vector.load %arg3[%5, %c0_3, %c0_4] : memref<1x32x32xf32, #tpu.memory_space<vmem>>, vector<1x32x32xf32>
    %7 = vector.shape_cast %6 : vector<1x32x32xf32> to vector<32x32xf32>
    %cst = arith.constant dense<0.000000e+00> : vector<8x32xf32>
    %8 = tpu.matmul %4, %7, %cst {dimension_numbers = #tpu.dot_dimension_numbers<[1], [0], [0], [1], [0, 0, 1, 1], [], []>} : vector<8x32xf32>, vector<32x32xf32>, vector<8x32xf32> -> vector<8x32xf32>
    %9 = arith.index_cast %arg1 : i32 to index
    %c0_5 = arith.constant 0 : index
    %c0_6 = arith.constant 0 : index
    %10 = vector.load %arg4[%9, %c0_5, %c0_6] : memref<1x32x32xf32, #tpu.memory_space<vmem>>, vector<1x32x32xf32>
    %11 = vector.shape_cast %10 : vector<1x32x32xf32> to vector<32x32xf32>
    %cst_7 = arith.constant dense<0.000000e+00> : vector<8x32xf32>
    %12 = tpu.matmul %4, %11, %cst_7 {dimension_numbers = #tpu.dot_dimension_numbers<[1], [0], [0], [1], [0, 0, 1, 1], [], []>} : vector<8x32xf32>, vector<32x32xf32>, vector<8x32xf32> -> vector<8x32xf32>
    %13 = arith.index_cast %arg1 : i32 to index
    %c0_8 = arith.constant 0 : index
    %c0_9 = arith.constant 0 : index
    %14 = vector.load %arg5[%13, %c0_8, %c0_9] : memref<1x32x32xf32, #tpu.memory_space<vmem>>, vector<1x32x32xf32>
    %15 = vector.shape_cast %14 : vector<1x32x32xf32> to vector<32x32xf32>
    %cst_10 = arith.constant dense<0.000000e+00> : vector<8x32xf32>
    %16 = tpu.matmul %4, %15, %cst_10 {dimension_numbers = #tpu.dot_dimension_numbers<[1], [0], [0], [1], [0, 0, 1, 1], [], []>} : vector<8x32xf32>, vector<32x32xf32>, vector<8x32xf32> -> vector<8x32xf32>
    %17 = vector.extract_strided_slice %8 {offsets = [0, 0], sizes = [8, 8], strides = [1, 1]} : vector<8x32xf32> to vector<8x8xf32>
    %18 = vector.extract_strided_slice %12 {offsets = [0, 0], sizes = [8, 8], strides = [1, 1]} : vector<8x32xf32> to vector<8x8xf32>
    %19 = vector.extract_strided_slice %16 {offsets = [0, 0], sizes = [8, 8], strides = [1, 1]} : vector<8x32xf32> to vector<8x8xf32>
    %cst_11 = arith.constant dense<0.000000e+00> : vector<8x8xf32>
    %20 = tpu.matmul %17, %18, %cst_11 {dimension_numbers = #tpu.dot_dimension_numbers<[1], [1], [0], [0], [0, 0, 1, 0], [], []>} : vector<8x8xf32>, vector<8x8xf32>, vector<8x8xf32> -> vector<8x8xf32>
    %c4_i32 = arith.constant 4 : i32
    %21 = arith.muli %arg1, %c4_i32 : i32
    %c0_i32_12 = arith.constant 0 : i32
    %22 = arith.addi %21, %c0_i32_12 : i32
    %23 = arith.index_cast %22 : i32 to index
    %c0_13 = arith.constant 0 : index
    %c0_14 = arith.constant 0 : index
    %24 = vector.load %arg7[%23, %c0_13, %c0_14] : memref<4x8x8xf32, #tpu.memory_space<vmem>>, vector<1x8x8xf32>
    %25 = vector.shape_cast %24 : vector<1x8x8xf32> to vector<8x8xf32>
    %26 = arith.addf %20, %25 : vector<8x8xf32>
    %cst_15 = arith.constant dense<0xFF800000> : vector<8xf32>
    %27 = vector.multi_reduction <maximumf>, %26, %cst_15 [1] : vector<8x8xf32> to vector<8xf32>
    %28 = vector.shape_cast %27 : vector<8xf32> to vector<8x1xf32>
    %29 = vector.broadcast %28 : vector<8x1xf32> to vector<8x8xf32>
    %30 = arith.subf %26, %29 : vector<8x8xf32>
    %31 = math.exp %30 : vector<8x8xf32>
    %cst_16 = arith.constant dense<0.000000e+00> : vector<8xf32>
    %32 = vector.multi_reduction <add>, %31, %cst_16 [1] : vector<8x8xf32> to vector<8xf32>
    %33 = vector.shape_cast %32 : vector<8xf32> to vector<8x1xf32>
    %34 = tpu.reciprocal %33 : vector<8x1xf32> -> vector<8x1xf32>
    %35 = vector.broadcast %34 : vector<8x1xf32> to vector<8x8xf32>
    %36 = arith.mulf %31, %35 : vector<8x8xf32>
    %c0_17 = arith.constant 0 : index
    %c0_18 = arith.constant 0 : index
    %c0_19 = arith.constant 0 : index
    %c0_20 = arith.constant 0 : index
    %37 = vector.load %arg9[%c0_17, %c0_18, %c0_19, %c0_20] : memref<1x4x8x8xf32, #tpu.memory_space<vmem>>, vector<1x1x8x8xf32>
    %38 = vector.shape_cast %37 : vector<1x1x8x8xf32> to vector<8x8xf32>
    %39 = vector.shape_cast %36 : vector<8x8xf32> to vector<1x1x8x8xf32>
    tpu.vector_store %arg9[%c0_17, %c0_18, %c0_19, %c0_20], %39 {strides = array<i32>} : memref<1x4x8x8xf32, #tpu.memory_space<vmem>>, vector<1x1x8x8xf32>,
    %cst_21 = arith.constant dense<0.000000e+00> : vector<8x8xf32>
    %40 = tpu.matmul %36, %19, %cst_21 {dimension_numbers = #tpu.dot_dimension_numbers<[1], [0], [0], [1], [0, 0, 1, 1], [], []>} : vector<8x8xf32>, vector<8x8xf32>, vector<8x8xf32> -> vector<8x8xf32>
    %41 = vector.extract_strided_slice %8 {offsets = [0, 8], sizes = [8, 8], strides = [1, 1]} : vector<8x32xf32> to vector<8x8xf32>
    %42 = vector.extract_strided_slice %12 {offsets = [0, 8], sizes = [8, 8], strides = [1, 1]} : vector<8x32xf32> to vector<8x8xf32>
    %43 = vector.extract_strided_slice %16 {offsets = [0, 8], sizes = [8, 8], strides = [1, 1]} : vector<8x32xf32> to vector<8x8xf32>
    %cst_22 = arith.constant dense<0.000000e+00> : vector<8x8xf32>
    %44 = tpu.matmul %41, %42, %cst_22 {dimension_numbers = #tpu.dot_dimension_numbers<[1], [1], [0], [0], [0, 0, 1, 0], [], []>} : vector<8x8xf32>, vector<8x8xf32>, vector<8x8xf32> -> vector<8x8xf32>
    %c4_i32_23 = arith.constant 4 : i32
    %45 = arith.muli %arg1, %c4_i32_23 : i32
    %c1_i32 = arith.constant 1 : i32
    %46 = arith.addi %45, %c1_i32 : i32
    %47 = arith.index_cast %46 : i32 to index
    %c0_24 = arith.constant 0 : index
    %c0_25 = arith.constant 0 : index
    %48 = vector.load %arg7[%47, %c0_24, %c0_25] : memref<4x8x8xf32, #tpu.memory_space<vmem>>, vector<1x8x8xf32>
    %49 = vector.shape_cast %48 : vector<1x8x8xf32> to vector<8x8xf32>
    %50 = arith.addf %44, %49 : vector<8x8xf32>
    %cst_26 = arith.constant dense<0xFF800000> : vector<8xf32>
    %51 = vector.multi_reduction <maximumf>, %50, %cst_26 [1] : vector<8x8xf32> to vector<8xf32>
    %52 = vector.shape_cast %51 : vector<8xf32> to vector<8x1xf32>
    %53 = vector.broadcast %52 : vector<8x1xf32> to vector<8x8xf32>
    %54 = arith.subf %50, %53 : vector<8x8xf32>
    %55 = math.exp %54 : vector<8x8xf32>
    %cst_27 = arith.constant dense<0.000000e+00> : vector<8xf32>
    %56 = vector.multi_reduction <add>, %55, %cst_27 [1] : vector<8x8xf32> to vector<8xf32>
    %57 = vector.shape_cast %56 : vector<8xf32> to vector<8x1xf32>
    %58 = tpu.reciprocal %57 : vector<8x1xf32> -> vector<8x1xf32>
    %59 = vector.broadcast %58 : vector<8x1xf32> to vector<8x8xf32>
    %60 = arith.mulf %55, %59 : vector<8x8xf32>
    %c0_28 = arith.constant 0 : index
    %c1 = arith.constant 1 : index
    %c0_29 = arith.constant 0 : index
    %c0_30 = arith.constant 0 : index
    %61 = vector.load %arg9[%c0_28, %c1, %c0_29, %c0_30] : memref<1x4x8x8xf32, #tpu.memory_space<vmem>>, vector<1x1x8x8xf32>
    %62 = vector.shape_cast %61 : vector<1x1x8x8xf32> to vector<8x8xf32>
    %63 = vector.shape_cast %60 : vector<8x8xf32> to vector<1x1x8x8xf32>
    tpu.vector_store %arg9[%c0_28, %c1, %c0_29, %c0_30], %63 {strides = array<i32>} : memref<1x4x8x8xf32, #tpu.memory_space<vmem>>, vector<1x1x8x8xf32>,
    %cst_31 = arith.constant dense<0.000000e+00> : vector<8x8xf32>
    %64 = tpu.matmul %60, %43, %cst_31 {dimension_numbers = #tpu.dot_dimension_numbers<[1], [0], [0], [1], [0, 0, 1, 1], [], []>} : vector<8x8xf32>, vector<8x8xf32>, vector<8x8xf32> -> vector<8x8xf32>
    %65 = vector.extract_strided_slice %8 {offsets = [0, 16], sizes = [8, 8], strides = [1, 1]} : vector<8x32xf32> to vector<8x8xf32>
    %66 = vector.extract_strided_slice %12 {offsets = [0, 16], sizes = [8, 8], strides = [1, 1]} : vector<8x32xf32> to vector<8x8xf32>
    %67 = vector.extract_strided_slice %16 {offsets = [0, 16], sizes = [8, 8], strides = [1, 1]} : vector<8x32xf32> to vector<8x8xf32>
    %cst_32 = arith.constant dense<0.000000e+00> : vector<8x8xf32>
    %68 = tpu.matmul %65, %66, %cst_32 {dimension_numbers = #tpu.dot_dimension_numbers<[1], [1], [0], [0], [0, 0, 1, 0], [], []>} : vector<8x8xf32>, vector<8x8xf32>, vector<8x8xf32> -> vector<8x8xf32>
    %c4_i32_33 = arith.constant 4 : i32
    %69 = arith.muli %arg1, %c4_i32_33 : i32
    %c2_i32 = arith.constant 2 : i32
    %70 = arith.addi %69, %c2_i32 : i32
    %71 = arith.index_cast %70 : i32 to index
    %c0_34 = arith.constant 0 : index
    %c0_35 = arith.constant 0 : index
    %72 = vector.load %arg7[%71, %c0_34, %c0_35] : memref<4x8x8xf32, #tpu.memory_space<vmem>>, vector<1x8x8xf32>
    %73 = vector.shape_cast %72 : vector<1x8x8xf32> to vector<8x8xf32>
    %74 = arith.addf %68, %73 : vector<8x8xf32>
    %cst_36 = arith.constant dense<0xFF800000> : vector<8xf32>
    %75 = vector.multi_reduction <maximumf>, %74, %cst_36 [1] : vector<8x8xf32> to vector<8xf32>
    %76 = vector.shape_cast %75 : vector<8xf32> to vector<8x1xf32>
    %77 = vector.broadcast %76 : vector<8x1xf32> to vector<8x8xf32>
    %78 = arith.subf %74, %77 : vector<8x8xf32>
    %79 = math.exp %78 : vector<8x8xf32>
    %cst_37 = arith.constant dense<0.000000e+00> : vector<8xf32>
    %80 = vector.multi_reduction <add>, %79, %cst_37 [1] : vector<8x8xf32> to vector<8xf32>
    %81 = vector.shape_cast %80 : vector<8xf32> to vector<8x1xf32>
    %82 = tpu.reciprocal %81 : vector<8x1xf32> -> vector<8x1xf32>
    %83 = vector.broadcast %82 : vector<8x1xf32> to vector<8x8xf32>
    %84 = arith.mulf %79, %83 : vector<8x8xf32>
    %c0_38 = arith.constant 0 : index
    %c2 = arith.constant 2 : index
    %c0_39 = arith.constant 0 : index
    %c0_40 = arith.constant 0 : index
    %85 = vector.load %arg9[%c0_38, %c2, %c0_39, %c0_40] : memref<1x4x8x8xf32, #tpu.memory_space<vmem>>, vector<1x1x8x8xf32>
    %86 = vector.shape_cast %85 : vector<1x1x8x8xf32> to vector<8x8xf32>
    %87 = vector.shape_cast %84 : vector<8x8xf32> to vector<1x1x8x8xf32>
    tpu.vector_store %arg9[%c0_38, %c2, %c0_39, %c0_40], %87 {strides = array<i32>} : memref<1x4x8x8xf32, #tpu.memory_space<vmem>>, vector<1x1x8x8xf32>,
    %cst_41 = arith.constant dense<0.000000e+00> : vector<8x8xf32>
    %88 = tpu.matmul %84, %67, %cst_41 {dimension_numbers = #tpu.dot_dimension_numbers<[1], [0], [0], [1], [0, 0, 1, 1], [], []>} : vector<8x8xf32>, vector<8x8xf32>, vector<8x8xf32> -> vector<8x8xf32>
    %89 = vector.extract_strided_slice %8 {offsets = [0, 24], sizes = [8, 8], strides = [1, 1]} : vector<8x32xf32> to vector<8x8xf32>
    %90 = vector.extract_strided_slice %12 {offsets = [0, 24], sizes = [8, 8], strides = [1, 1]} : vector<8x32xf32> to vector<8x8xf32>
    %91 = vector.extract_strided_slice %16 {offsets = [0, 24], sizes = [8, 8], strides = [1, 1]} : vector<8x32xf32> to vector<8x8xf32>
    %cst_42 = arith.constant dense<0.000000e+00> : vector<8x8xf32>
    %92 = tpu.matmul %89, %90, %cst_42 {dimension_numbers = #tpu.dot_dimension_numbers<[1], [1], [0], [0], [0, 0, 1, 0], [], []>} : vector<8x8xf32>, vector<8x8xf32>, vector<8x8xf32> -> vector<8x8xf32>
    %c4_i32_43 = arith.constant 4 : i32
    %93 = arith.muli %arg1, %c4_i32_43 : i32
    %c3_i32 = arith.constant 3 : i32
    %94 = arith.addi %93, %c3_i32 : i32
    %95 = arith.index_cast %94 : i32 to index
    %c0_44 = arith.constant 0 : index
    %c0_45 = arith.constant 0 : index
    %96 = vector.load %arg7[%95, %c0_44, %c0_45] : memref<4x8x8xf32, #tpu.memory_space<vmem>>, vector<1x8x8xf32>
    %97 = vector.shape_cast %96 : vector<1x8x8xf32> to vector<8x8xf32>
    %98 = arith.addf %92, %97 : vector<8x8xf32>
    %cst_46 = arith.constant dense<0xFF800000> : vector<8xf32>
    %99 = vector.multi_reduction <maximumf>, %98, %cst_46 [1] : vector<8x8xf32> to vector<8xf32>
    %100 = vector.shape_cast %99 : vector<8xf32> to vector<8x1xf32>
    %101 = vector.broadcast %100 : vector<8x1xf32> to vector<8x8xf32>
    %102 = arith.subf %98, %101 : vector<8x8xf32>
    %103 = math.exp %102 : vector<8x8xf32>
    %cst_47 = arith.constant dense<0.000000e+00> : vector<8xf32>
    %104 = vector.multi_reduction <add>, %103, %cst_47 [1] : vector<8x8xf32> to vector<8xf32>
    %105 = vector.shape_cast %104 : vector<8xf32> to vector<8x1xf32>
    %106 = tpu.reciprocal %105 : vector<8x1xf32> -> vector<8x1xf32>
    %107 = vector.broadcast %106 : vector<8x1xf32> to vector<8x8xf32>
    %108 = arith.mulf %103, %107 : vector<8x8xf32>
    %c0_48 = arith.constant 0 : index
    %c3 = arith.constant 3 : index
    %c0_49 = arith.constant 0 : index
    %c0_50 = arith.constant 0 : index
    %109 = vector.load %arg9[%c0_48, %c3, %c0_49, %c0_50] : memref<1x4x8x8xf32, #tpu.memory_space<vmem>>, vector<1x1x8x8xf32>
    %110 = vector.shape_cast %109 : vector<1x1x8x8xf32> to vector<8x8xf32>
    %111 = vector.shape_cast %108 : vector<8x8xf32> to vector<1x1x8x8xf32>
    tpu.vector_store %arg9[%c0_48, %c3, %c0_49, %c0_50], %111 {strides = array<i32>} : memref<1x4x8x8xf32, #tpu.memory_space<vmem>>, vector<1x1x8x8xf32>,
    %cst_51 = arith.constant dense<0.000000e+00> : vector<8x8xf32>
    %112 = tpu.matmul %108, %91, %cst_51 {dimension_numbers = #tpu.dot_dimension_numbers<[1], [0], [0], [1], [0, 0, 1, 1], [], []>} : vector<8x8xf32>, vector<8x8xf32>, vector<8x8xf32> -> vector<8x8xf32>
    %113 = tpu.concatenate %40, %64, %88, %112 in 1 : vector<8x8xf32>, vector<8x8xf32>, vector<8x8xf32>, vector<8x8xf32> -> vector<8x32xf32>
    %c0_52 = arith.constant 0 : index
    %c0_53 = arith.constant 0 : index
    %114 = vector.load %arg10[%c0_52, %c0_53] : memref<8x32xf32, #tpu.memory_space<vmem>>, vector<8x32xf32>
    %115 = arith.index_cast %arg1 : i32 to index
    %c0_54 = arith.constant 0 : index
    %c0_55 = arith.constant 0 : index
    %116 = vector.load %arg6[%115, %c0_54, %c0_55] : memref<1x32x32xf32, #tpu.memory_space<vmem>>, vector<1x32x32xf32>
    %117 = vector.shape_cast %116 : vector<1x32x32xf32> to vector<32x32xf32>
    %cst_56 = arith.constant dense<0.000000e+00> : vector<8x32xf32>
    %118 = tpu.matmul %113, %117, %cst_56 {dimension_numbers = #tpu.dot_dimension_numbers<[1], [0], [0], [1], [0, 0, 1, 1], [], []>} : vector<8x32xf32>, vector<32x32xf32>, vector<8x32xf32> -> vector<8x32xf32>
    %119 = arith.addf %114, %118 : vector<8x32xf32>
    %c0_57 = arith.constant 0 : index
    %c0_58 = arith.constant 0 : index
    %120 = vector.load %arg10[%c0_57, %c0_58] : memref<8x32xf32, #tpu.memory_space<vmem>>, vector<8x32xf32>
    tpu.vector_store %arg10[%c0_57, %c0_58], %119 {strides = array<i32>} : memref<8x32xf32, #tpu.memory_space<vmem>>, vector<8x32xf32>,
    %c0_i32_59 = arith.constant 0 : i32
    %121 = arith.cmpi eq, %arg1, %c0_i32_59 : i32
    %122 = arith.extui %121 : i1 to i32
    %c0_i32_60 = arith.constant 0 : i32
    %123 = arith.cmpi ne, %122, %c0_i32_60 : i32
    scf.if %123 {
      %c0_61 = arith.constant 0 : index
      %c0_62 = arith.constant 0 : index
      %124 = vector.load %arg10[%c0_61, %c0_62] : memref<8x32xf32, #tpu.memory_space<vmem>>, vector<8x32xf32>
      %c0_63 = arith.constant 0 : index
      %c0_64 = arith.constant 0 : index
      %c0_65 = arith.constant 0 : index
      %125 = vector.load %arg8[%c0_63, %c0_64, %c0_65] : memref<1x8x32xf32, #tpu.memory_space<vmem>>, vector<1x8x32xf32>
      %126 = vector.shape_cast %125 : vector<1x8x32xf32> to vector<8x32xf32>
      %127 = vector.shape_cast %124 : vector<8x32xf32> to vector<1x8x32xf32>
      tpu.vector_store %arg8[%c0_63, %c0_64, %c0_65], %127 {strides = array<i32>} : memref<1x8x32xf32, #tpu.memory_space<vmem>>, vector<1x8x32xf32>,
    } else {
    }
    return
  }
  func.func @transform_0(%arg0: i32, %arg1: i32) -> (i32, i32, i32) {
    %c0_i32 = arith.constant 0 : i32
    %c0_i32_0 = arith.constant 0 : i32
    %c0_i32_1 = arith.constant 0 : i32
    return %arg0, %c0_i32, %c0_i32_0 : i32, i32, i32
  }
  func.func @transform_1(%arg0: i32, %arg1: i32) -> (i32, i32, i32) {
    %c0_i32 = arith.constant 0 : i32
    %c0_i32_0 = arith.constant 0 : i32
    %c0_i32_1 = arith.constant 0 : i32
    %c0_i32_2 = arith.constant 0 : i32
    return %c0_i32, %c0_i32_0, %c0_i32_1 : i32, i32, i32
  }
  func.func @transform_2(%arg0: i32, %arg1: i32) -> (i32, i32, i32) {
    %c0_i32 = arith.constant 0 : i32
    %c0_i32_0 = arith.constant 0 : i32
    %c0_i32_1 = arith.constant 0 : i32
    %c0_i32_2 = arith.constant 0 : i32
    return %c0_i32, %c0_i32_0, %c0_i32_1 : i32, i32, i32
  }
  func.func @transform_3(%arg0: i32, %arg1: i32) -> (i32, i32, i32) {
    %c0_i32 = arith.constant 0 : i32
    %c0_i32_0 = arith.constant 0 : i32
    %c0_i32_1 = arith.constant 0 : i32
    %c0_i32_2 = arith.constant 0 : i32
    return %c0_i32, %c0_i32_0, %c0_i32_1 : i32, i32, i32
  }
  func.func @transform_4(%arg0: i32, %arg1: i32) -> (i32, i32, i32) {
    %c0_i32 = arith.constant 0 : i32
    %c0_i32_0 = arith.constant 0 : i32
    %c0_i32_1 = arith.constant 0 : i32
    %c0_i32_2 = arith.constant 0 : i32
    return %c0_i32, %c0_i32_0, %c0_i32_1 : i32, i32, i32
  }
  func.func @transform_5(%arg0: i32, %arg1: i32) -> (i32, i32, i32) {
    %c0_i32 = arith.constant 0 : i32
    %c0_i32_0 = arith.constant 0 : i32
    %c0_i32_1 = arith.constant 0 : i32
    %c0_i32_2 = arith.constant 0 : i32
    return %c0_i32, %c0_i32_0, %c0_i32_1 : i32, i32, i32
  }
  func.func @transform_6(%arg0: i32, %arg1: i32) -> (i32, i32, i32) {
    %c0_i32 = arith.constant 0 : i32
    %c0_i32_0 = arith.constant 0 : i32
    %c0_i32_1 = arith.constant 0 : i32
    return %arg0, %c0_i32, %c0_i32_0 : i32, i32, i32
  }
  func.func @transform_7(%arg0: i32, %arg1: i32) -> (i32, i32, i32, i32) {
    %c0_i32 = arith.constant 0 : i32
    %c0_i32_0 = arith.constant 0 : i32
    %c0_i32_1 = arith.constant 0 : i32
    return %arg0, %arg1, %c0_i32, %c0_i32_0 : i32, i32, i32, i32
  }
}

</mosaic_0001>

<bundles_post_ra>
// kernel: tpu_custom_call.1
= control target key start
LH: loop header
LB: loop body
LE: loop exit
PB: predicated region body
PF: predicated region fallthrough
CT: control target
= control target key end

     0   :  { %s2803_s0 = inlined_call_operand.hbm [shape: f32[2,8,32], index: 0, kind: input, shape index: {}]   ;;  %s2804_s1 = inlined_call_operand.hbm [shape: f32[1,32,32], index: 1, kind: input, shape index: {}]   ;;  %s2805_s2 = inlined_call_operand.hbm [shape: f32[1,32,32], index: 2, kind: input, shape index: {}]   ;;  %s2806_s3 = inlined_call_operand.hbm [shape: f32[1,32,32], index: 3, kind: input, shape index: {}]   ;;  %s2807_s4 = inlined_call_operand.hbm [shape: f32[1,32,32], index: 4, kind: input, shape index: {}]   ;;  %s2808_s5 = inlined_call_operand.hbm [shape: f32[4,8,8], index: 5, kind: input, shape index: {}]   ;;  %s2809_s6 = inlined_call_operand.hbm [shape: f32[2,8,32], index: 6, kind: output, shape index: {0}]   ;;  %s2810_s7 = inlined_call_operand.hbm [shape: f32[2,4,8,8], index: 7, kind: output, shape index: {1}]  }
   0x1   :  { %2817 = sst [smem:[#allocation23_spill]] %s2804_s1 }
   0x2   :  { %2818 = sst [smem:[#allocation24_spill]] %s2809_s6 }
   0x3   :  { %13 = vsyncpa [#allocation4], 0 }
   0x4   :  { %15 = vsyncpa [#allocation4 + $0x1], 0 }
   0x5   :  { %16 = vsyncpa [#allocation7], 0 }
   0x6   :  { %17 = vsyncpa [#allocation10], 0 }
   0x7   :  { %18 = vsyncpa [#allocation13], 0 }
   0x8   :  { %19 = vsyncpa [#allocation5], 0 }
   0x9   :  { %21 = vsyncpa [#allocation5 + $0x1], 0 }
   0xa   :  { %22 = vsyncpa [#allocation16], 0 }
   0xb   :  { %24 = vsyncpa [#allocation16 + $0x1], 0  ;;  %s2331_s24 = smov 0   ;;  %s2333_s25 = smov 0  }
   0xc   :  { %s2335_s26 = smov 0   ;;  %s2337_s27 = smov 0  }
   0xd   :  { %s2339_s28 = smov 0   ;;  %s2341_s29 = smov 0  }
   0xe LB: > { %s2811_s30 = sadd.s32 4294967295, %s2269_s29   ;;  %p1635_p0 = scmp.ge.s32.totalorder %s2269_s29, 1  ;;  %s2269_s29 = sphi %s2341_s29, %s30_s29   ;;  %s2265_s28 = sphi %s2339_s28, %s2841_s28   ;;  %s2261_s27 = sphi %s2337_s27, %s2840_s27   ;;  %s2257_s26 = sphi %s2335_s26, %s2839_s26   ;;  %s2253_s25 = sphi %s2333_s25, %s2838_s25   ;;  %s2249_s24 = sphi %s2331_s24, %s2837_s24  }
   0xf   : > { %p2365_p1 = scmp.eq.s32.totalorder %s2811_s30, 0  ;;  %p232_p2 = scmp.lt.s32.totalorder %s2269_s29, 3 }
  0x10   : > { %s2271_s10 = smov [#allocation6]   ;;  %s2272_s13 = smov [#allocation9]  }
  0x11   : > { %s2819_s8 = scalar_select %p2365_p1, 1, 0 }
  0x12   : > { %p2370_p3 = pnand %p1635_p0, %p232_p2  ;;  %s244_s11 = sshll.u32 %s2271_s10, 4  ;;  %s2374_s11 = int_to_ptr.vmem [resolvable:$true] %s244_s11 }
  0x13   : > { %s270_s14 = sshll.u32 %s2272_s13, 4  ;;  %s2273_s15 = smov [#allocation8]   ;;  %s2385_s14 = int_to_ptr.vmem [resolvable:$true] %s270_s14 }
  0x14   : > { %s2820_s9 = scalar_select %p2370_p3, 1, 0 }
  0x15   : > { %p1853_p4 = pneg %p2370_p3  ;;  %s2387_s16 = sshll.u32 %s2273_s15, 4  ;;  %s258_s16 = int_to_ptr.vmem [resolvable:$true] %s2387_s16 }
  0x16   : > { %s2822_s1 = sld [smem:[#allocation23_spill]] }
  0x17   : > { %p2381_p6 = pnand %p1853_p4, %p2365_p1 }
  0x19   : > { %p2397_p8 = pneg %p2381_p6 }
  0x1c   : > { %s1973_s19 = scalar_lea.hbm %s2822_s1, 512 }
  0x1d   : > { %p1974_p7 = scmp.ne.s32.totalorder %s2822_s1, %s1973_s19  ;;  %p1980_p11 = scmp.lt.u32.totalorder %s1973_s19, %s2822_s1 }
  0x1f   : > { %p1976_p9 = pnand %p2397_p8, %p1974_p7 }
  0x21   : > { %p1977_p10 = pneg %p1976_p9 }
  0x23   : > { %p1982_p12 = pnand %p1980_p11, %p1977_p10 }
  0x25   : > { %1985 = shalt.err (!%p1982_p12)
}
  0x26   : > { %s1986_s13 = scalar_lea.vmem %s2374_s11, 512  ;;  %p1994_p4 = scmp.lt.s32.totalorder %s2374_s11, %s2374_s11 }
  0x27   : > { %p1987_p13 = scmp.ne.s32.totalorder %s2374_s11, %s1986_s13  ;;  %p1995_p5 = scmp.lt.s32.totalorder %s1986_s13, %s1986_s13 }
  0x29   : > { %p1989_p0 = pnand %p1987_p13, %p2397_p8  ;;  %p1996_p7 = por %p1995_p5, %p1994_p4 }
  0x2b   : > { %p1990_p2 = pneg %p1989_p0 }
  0x2d   : > { %p1997_p9 = pnand %p1996_p7, %p1990_p2 }
  0x2f   : > { %2000 = shalt.err (!%p1997_p9)
}
  0x30   : > { %s2274_s15 = smov 128   ;;  %s2275_s17 = smov 8  }
  0x31   : > { %1856 = dma.hbm_to_vmem [thread:$0]  (!%p2381_p6), %s2822_s1, 512, %s2374_s11, [#allocation7], %s2274_s15, %s2274_s15, %s2275_s17  }
  0x32   : > { %s2001_s23 = scalar_lea.hbm %s2806_s3, 512 }
  0x33   : > { %p2002_p5 = scmp.ne.s32.totalorder %s2806_s3, %s2001_s23  ;;  %p2008_p12 = scmp.lt.u32.totalorder %s2001_s23, %s2806_s3 }
  0x35   : > { %p2004_p10 = pnand %p2002_p5, %p2397_p8 }
  0x37   : > { %p2005_p11 = pneg %p2004_p10 }
  0x39   : > { %p2010_p13 = pnand %p2008_p12, %p2005_p11 }
  0x3b   : > { %2013 = shalt.err (!%p2010_p13)
}
  0x3c   : > { %s2014_s11 = scalar_lea.vmem %s2385_s14, 512  ;;  %p2022_p7 = scmp.lt.s32.totalorder %s2385_s14, %s2385_s14 }
  0x3d   : > { %p2015_p0 = scmp.ne.s32.totalorder %s2385_s14, %s2014_s11  ;;  %p2023_p9 = scmp.lt.s32.totalorder %s2014_s11, %s2014_s11 }
  0x3f   : > { %p2017_p2 = pnand %p2015_p0, %p2397_p8  ;;  %p2024_p5 = por %p2023_p9, %p2022_p7 }
  0x41   : > { %p2018_p4 = pneg %p2017_p2 }
  0x43   : > { %p2025_p10 = pnand %p2024_p5, %p2018_p4 }
  0x45   : > { %2028 = shalt.err (!%p2025_p10)
}
  0x46   : > { %1862 = dma.hbm_to_vmem [thread:$0]  (!%p2381_p6), %s2806_s3, 512, %s2385_s14, [#allocation10], %s2274_s15, %s2274_s15, %s2275_s17  }
  0x47   : > { %s2029_s20 = scalar_lea.hbm %s2805_s2, 512 }
  0x48   : > { %p2030_p11 = scmp.ne.s32.totalorder %s2805_s2, %s2029_s20  ;;  %p2036_p0 = scmp.lt.u32.totalorder %s2029_s20, %s2805_s2 }
  0x4a   : > { %p2032_p12 = pnand %p2030_p11, %p2397_p8 }
  0x4c   : > { %p2033_p13 = pneg %p2032_p12 }
  0x4e   : > { %p2038_p2 = pnand %p2036_p0, %p2033_p13 }
  0x50   : > { %2041 = shalt.err (!%p2038_p2)
}
  0x51   : > { %s2042_s11 = scalar_lea.vmem %s258_s16, 512  ;;  %p2050_p5 = scmp.lt.s32.totalorder %s258_s16, %s258_s16 }
  0x52   : > { %p2043_p4 = scmp.ne.s32.totalorder %s258_s16, %s2042_s11  ;;  %p2051_p10 = scmp.lt.s32.totalorder %s2042_s11, %s2042_s11 }
  0x54   : > { %p2045_p7 = pnand %p2043_p4, %p2397_p8  ;;  %p2052_p3 = por %p2051_p10, %p2050_p5 }
  0x56   : > { %p2046_p9 = pneg %p2045_p7 }
  0x58   : > { %p2053_p1 = pnand %p2052_p3, %p2046_p9 }
  0x5a   : > { %2056 = shalt.err (!%p2053_p1)
}
  0x5b   : > { %1859 = dma.hbm_to_vmem [thread:$0]  (!%p2381_p6), %s2805_s2, 512, %s258_s16, [#allocation7], %s2274_s15, %s2274_s15, %s2275_s17  }
  0x5c   : > { %s2276_s30 = smov [#allocation11]   ;;  %s2277_s19 = smov [#allocation12]  }
  0x5d   : > { %s283_s18 = sshll.u32 %s2276_s30, 4  ;;  %s296_s20 = sshll.u32 %s2277_s19, 4  ;;  %s284_s18 = int_to_ptr.vmem [resolvable:$true] %s283_s18  ;;  %s297_s20 = int_to_ptr.vmem [resolvable:$true] %s296_s20 }
  0x5e   : > { %s2057_s10 = scalar_lea.hbm %s2807_s4, 512 }
  0x5f   : > { %p2058_p1 = scmp.ne.s32.totalorder %s2807_s4, %s2057_s10  ;;  %p2064_p12 = scmp.lt.u32.totalorder %s2057_s10, %s2807_s4 }
  0x61   : > { %p2060_p3 = pnand %p2058_p1, %p2397_p8 }
  0x63   : > { %p2061_p11 = pneg %p2060_p3 }
  0x65   : > { %p2066_p13 = pnand %p2064_p12, %p2061_p11 }
  0x67   : > { %2069 = shalt.err (!%p2066_p13)
}
  0x68   : > { %s2070_s16 = scalar_lea.vmem %s284_s18, 512  ;;  %p2078_p7 = scmp.lt.s32.totalorder %s284_s18, %s284_s18 }
  0x69   : > { %p2071_p0 = scmp.ne.s32.totalorder %s284_s18, %s2070_s16  ;;  %p2079_p9 = scmp.lt.s32.totalorder %s2070_s16, %s2070_s16 }
  0x6b   : > { %p2073_p2 = pnand %p2071_p0, %p2397_p8  ;;  %p2080_p5 = por %p2079_p9, %p2078_p7 }
  0x6d   : > { %p2074_p4 = pneg %p2073_p2 }
  0x6f   : > { %p2081_p10 = pnand %p2080_p5, %p2074_p4 }
  0x71   : > { %2084 = shalt.err (!%p2081_p10)
}
  0x72   : > { %1865 = dma.hbm_to_vmem [thread:$0]  (!%p2381_p6), %s2807_s4, 512, %s284_s18, [#allocation10], %s2274_s15, %s2274_s15, %s2275_s17  }
  0x73   : > { %s2085_s21 = scalar_lea.hbm %s2808_s5, 512 }
  0x74   : > { %p2086_p1 = scmp.ne.s32.totalorder %s2808_s5, %s2085_s21  ;;  %p2092_p12 = scmp.lt.u32.totalorder %s2085_s21, %s2808_s5 }
  0x76   : > { %p2088_p3 = pnand %p2086_p1, %p2397_p8 }
  0x78   : > { %p2089_p11 = pneg %p2088_p3 }
  0x7a   : > { %p2094_p13 = pnand %p2092_p12, %p2089_p11 }
  0x7c   : > { %2097 = shalt.err (!%p2094_p13)
}
  0x7d   : > { %s2098_s14 = scalar_lea.vmem %s297_s20, 512  ;;  %p2106_p7 = scmp.lt.s32.totalorder %s297_s20, %s297_s20 }
  0x7e   : > { %p2099_p0 = scmp.ne.s32.totalorder %s297_s20, %s2098_s14  ;;  %p2107_p9 = scmp.lt.s32.totalorder %s2098_s14, %s2098_s14 }
  0x80   : > { %p2101_p2 = pnand %p2099_p0, %p2397_p8  ;;  %p2108_p5 = por %p2107_p9, %p2106_p7 }
  0x82   : > { %p2102_p4 = pneg %p2101_p2 }
  0x84   : > { %p2109_p10 = pnand %p2108_p5, %p2102_p4 }
  0x86   : > { %2112 = shalt.err (!%p2109_p10)
}
  0x87   : > { %1868 = dma.hbm_to_vmem [thread:$0]  (!%p2381_p6), %s2808_s5, 512, %s297_s20, [#allocation13], %s2274_s15, %s2274_s15, %s2275_s17  }
  0x88   : > { %s1634_s12 = sadd.s32 4294967294, %s2269_s29   ;;  %s42_s22 = sadd.s32 1, %s2265_s28 }
  0x89   : > { %s49_s1 = sadd.s32 1, %s2257_s26  ;;  %p44_p8 = scmp.ge.s32.totalorder %s42_s22, 2 }
  0x8a   : > { %p56_p1 = scmp.ne.s32.totalorder %s2257_s26, %s2253_s25  ;;  %p57_p3 = scmp.eq.s32.totalorder %s2269_s29, 0 }
  0x8b   : > { %p62_p11 = scmp.ne.s32.totalorder %s2253_s25, %s2249_s24  ;;  %s2843_s22 = smov (%p44_p8, %s42_s22), 0 }
  0x8c   : > { %p2521_p12 = por %p57_p3, %p56_p1  ;;  %p2825_p13 = scmp.ne.s32.totalorder %s2819_s8, 0 }
  0x8d   : > { %s46_s17 = ssub.s32 %s2265_s28, %s2843_s22  ;;  %s2827_s20 = sadd.s32 4294967295, %s2269_s29  }
  0x8e   : > { %p2527_p6 = por %p2825_p13, %p62_p11  ;;  %p191_p0 = scmp.eq.s32.totalorder %s2827_s20, 1 }
  0x8f   : > { %p47_p2 = scmp.eq.s32.totalorder %s46_s17, 0  ;;  %p197_p4 = scmp.eq.s32.totalorder %s1634_s12, 1 }
  0x90   : > { %p2535_p7 = por %p191_p0, %p56_p1  ;;  %p1885_p9 = scmp.lt.s32.totalorder %s2269_s29, 2 }
  0x91   : > { %s2541_s19 = scalar_select %p47_p2, %s2257_s26, %s49_s1  }
  0x92   : > { %s2828_s30 = scalar_select %p2535_p7, 1, 0 }
  0x93   : > { %p2543_p5 = por %p197_p4, %p62_p11  ;;  %s310_s23 = sand.u32 1, %s2257_s26  }
  0x94   : > { %s1642_s10 = sshll.u32 %s310_s23, 3  ;;  %s1643_s13 = sshll.u32 %s2265_s28, 7 }
  0x95   : > { %s2829_s21 = scalar_select %p2543_p5, 1, 0 }
  0x96   : > { %s2552_s18 = scalar_lea.hbm %s2803_s0, %s1643_s13  ;;  %s314_s16 = scalar_lea.vmem [#allocation3], %s1642_s10 }
  0x97   : > { %s321_s12 = sshll.u32 %s314_s16, 4  ;;  %p2558_p10 = pnand %p1885_p9, %p2521_p12  ;;  %s2554_s12 = int_to_ptr.vmem [resolvable:$true] %s321_s12 }
  0x98   : > { %s311_s17 = scalar_lea.sflag [#allocation4], %s310_s23  ;;  %s2113_s20 = scalar_lea.hbm %s2552_s18, 128 }
  0x99   : > { %p2114_p8 = scmp.ne.s32.totalorder %s2552_s18, %s2113_s20  ;;  %p2115_p1 = pneg %p2558_p10 }
  0x9a   : > { %s2118_s11 = scalar_lea.hbm %s2803_s0, 256  ;;  %p2119_p12 = scmp.lt.u32.totalorder %s2552_s18, %s2803_s0 }
  0x9b   : > { %p2116_p3 = pnand %p2115_p1, %p2114_p8  ;;  %p2120_p13 = scmp.lt.u32.totalorder %s2118_s11, %s2113_s20 }
  0x9c   : > { %p2122_p2 = scmp.lt.u32.totalorder %s2113_s20, %s2552_s18 }
  0x9d   : > { %p2117_p11 = pneg %p2116_p3  ;;  %p2121_p0 = por %p2120_p13, %p2119_p12 }
  0x9f   : > { %p2123_p4 = por %p2122_p2, %p2121_p0 }
  0xa1   : > { %p2124_p9 = pnand %p2123_p4, %p2117_p11 }
  0xa3   : > { %2127 = shalt.err (!%p2124_p9)
}
  0xa4   : > { %s2128_s23 = scalar_lea.vmem %s2554_s12, 128  ;;  %s2278_s16 = smov [#allocation3]  }
  0xa5   : > { %p2129_p8 = scmp.ne.s32.totalorder %s2554_s12, %s2128_s23  ;;  %s2133_s10 = sshll.u32 %s2278_s16, 4  ;;  %s2134_s10 = int_to_ptr.vmem [resolvable:$false] %s2133_s10 }
  0xa6   : > { %s2135_s13 = scalar_lea.vmem %s2134_s10, 256  ;;  %p2136_p7 = scmp.lt.s32.totalorder %s2554_s12, %s2134_s10 }
  0xa7   : > { %p2131_p3 = pnand %p2129_p8, %p2115_p1  ;;  %p2137_p12 = scmp.lt.s32.totalorder %s2135_s13, %s2128_s23 }
  0xa9   : > { %p2132_p5 = pneg %p2131_p3  ;;  %p2138_p13 = por %p2137_p12, %p2136_p7 }
  0xab   : > { %p2139_p0 = pnand %p2138_p13, %p2132_p5 }
  0xad   : > { %2142 = shalt.err (!%p2139_p0)
}
  0xae   : > { %1872 = dma.hbm_to_vmem [thread:$0]  (!%p2558_p10), %s2552_s18, 128, %s2554_s12, %s311_s17  }
  0xaf   : > { %p2831_p11 = scmp.ne.s32.totalorder %s2820_s9, 0 }
  0xb0   : > { %s2590_s20 = sand.u32 (!%p2831_p11), 1, %s2253_s25  }
  0xb1   : > { %330 = sbr.rel (%p2831_p11) target bundleno = 2107 (0x83b), region = 44  ;;  %s1645_s11 = sshll.u32 (!%p2831_p11), %s2590_s20, 3 }
  0xb2   : > { %s333_s6 = scalar_lea.sflag (!%p2831_p11), [#allocation4], %s2590_s20  ;;  %s2596_s14 = scalar_lea.vmem (!%p2831_p11), [#allocation3], %s1645_s11 }
  0xb8   : > { %2224 = dma.done.wait (%p2527_p6), %s333_s6, 128  }
  0xb9   : > { %2226 = vsyncadd (%p2527_p6), %s333_s6, 4294967168  ;;  %p2832_p7 = scmp.ne.s32.totalorder %s2819_s8, 0 }
  0xbb   : > { %2228 = dma.done.wait (%p2832_p7), [#allocation7], 1024  }
  0xbc   : > { %2230 = vsyncadd (%p2832_p7), [#allocation7], 4294966272 }
  0xbd   : > { %2232 = dma.done.wait (%p2832_p7), [#allocation10], 1024  }
  0xbe   : > { %2234 = vsyncadd (%p2832_p7), [#allocation10], 4294966272 }
  0xbf   : > { %2236 = dma.done.wait (%p2832_p7), [#allocation13], 512  }
  0xc0   : > { %2238 = vsyncadd (%p2832_p7), [#allocation13], 4294966784  ;;  %vm397_vm0 = vcmask 261120   ;;  %v2279_v0 = vmov 0.0|0.0   ;;  %v2280_v1 = vmov 0.0   ;;  %vm2281_vm1 = vmmov 0  }
  0xc1   : > { %1809 = vmatprep.subr.bf16.mxu1 %v2279_v0  ;;  %1803 = vmatprep.subr.bf16.mxu0 %v2279_v0  ;;  %398 = vst.msk [vmem:[#allocation2] sm:$0xff] %vm397_vm0, %v2280_v1  ;;  %v481_v2 = vld [vmem:[#allocation8] sm:$0xff]  ;;  %v482_v3 = vld [vmem:[#allocation8 + $0x8] sm:$0xff]  ;;  %v483_v7 = vld [vmem:[#allocation8 + $0x10] sm:$0xff]  ;;  %vm634_vm2 = vcmask 64512   ;;  %s2282_s8 = smov 120  }
  0xc2   : > { %1738 = vmatprep.mubr.msk.f32.mxu1 %vm2281_vm1, %v2280_v1  ;;  %1727 = vmatprep.mubr.msk.f32.mxu0 %vm2281_vm1, %v2280_v1  ;;  %v402_v4 = vld [vmem:[#allocation6] sm:$0xff]  ;;  %v1810_v5 = vpack.c.bf16 %v482_v3, %v481_v2  ;;  %v403_v6 = vld [vmem:[#allocation6 + $0x8] sm:$0xff]  ;;  %v484_v8 = vld [vmem:[#allocation8 + $0x18] sm:$0xff]  ;;  %s2283_s9 = smov 112   ;;  %s2284_s15 = smov 104   ;;  %vm1323_vm3 = vcmask 130048  }
  0xc3   : > { %v1804_v9 = vpack.c.bf16 %v403_v6, %v402_v4  ;;  %v404_v10 = vld [vmem:[#allocation6 + $0x10] sm:$0xff]  ;;  %v405_v11 = vld [vmem:[#allocation6 + $0x18] sm:$0xff]  ;;  %v1813_v12 = vpack.c.bf16 %v484_v8, %v483_v7  ;;  %v556_v19 = vld [vmem:[#allocation9] sm:$0xff]  ;;  %s1652_s18 = sshll.u32 %s2590_s20, 5  ;;  %s2285_s1 = smov 8   ;;  %vm1325_vm4 = vcmask 195584  }
  0xc4   : > { %1811 = vmatpush3.bf16.msra.mxu1 %v1810_v5  ;;  %v1807_v13 = vpack.c.bf16 %v405_v11, %v404_v10  ;;  %v399_v14 = vld [vmem:[%s2596_s14] sm:$0xff]  ;;  %v557_v20 = vld [vmem:[#allocation9 + $0x8] sm:$0xff]  ;;  %v633_v25 = vld [vmem:[#allocation12] sm:$0xff]  ;;  %s2666_s12 = scalar_lea.vmem [#allocation15], %s1652_s18  ;;  %s2286_s17 = smov 16  }
  0xc5   : > { %1805 = vmatpush3.bf16.msra.mxu0 %v1804_v9  ;;  %1812 = vmatprep.subr.bf16.mxu1 %v2279_v0  ;;  %v558_v21 = vld [vmem:[#allocation9 + $0x10] sm:$0xff]  ;;  %v1816_v22 = vpack.c.bf16 %v557_v20, %v556_v19  ;;  %v559_v23 = vld [vmem:[#allocation9 + $0x18] sm:$0xff]  ;;  %v1659_v55 = vld [vmem:[#allocation12 + $0x8] sm:$0xff]  ;;  %s2287_s23 = smov 24   ;;  %s1682_s16 = sshll.u32 %s2261_s27, 9 }
  0xc6   : > { %1806 = vmatprep.subr.bf16.mxu0 %v2279_v0  ;;  %v1819_v24 = vpack.c.bf16 %v559_v23, %v558_v21  ;;  %v1664_v46 = vld [vmem:[#allocation12 + $0x10] sm:$0xff]  ;;  %v1669_v56 = vld [vmem:[#allocation12 + $0x18] sm:$0xff]  ;;  %s1447_s10 = sshll.u32 %s2666_s12, 4  ;;  %s2717_s14 = scalar_lea.hbm %s2810_s7, %s1682_s16  ;;  %s2719_s10 = int_to_ptr.vmem [resolvable:$true] %s1447_s10 }
  0xc7   : > { %p2833_p5 = scmp.ne.s32.totalorder %s2828_s30, 0 }
  0xc8   : > { %1814 = vmatpush3.bf16.msra.mxu1 %v1813_v12 }
  0xc9   : > { %1808 = vmatpush3.bf16.msra.mxu0 %v1807_v13  ;;  %1752 = vmatprep.subr.mxu1 %v2280_v1 }
  0xca   : > { %1815 = vmatprep.subr.bf16.mxu0 %v2279_v0 }
  0xcb   : > { %1739 = vmatmul.mubr.msk.f32.vlgmr.msra.gmra.mrb[0].mxu1 %vm397_vm0, %v399_v14 }
  0xcc   : > { %1728 = vmatmul.mubr.msk.f32.vlgmr.msra.gmra.mrb[0].mxu0 %vm397_vm0, %v399_v14  ;;  %1754 = vmatprep.mubr.msk.f32.mxu1 %vm2281_vm1, %v2280_v1 }
  0xcd   : > { %1749 = vmatprep.mubr.msk.f32.mxu0 %vm2281_vm1, %v2280_v1  ;;  %1817 = vmatpush3.bf16.msra.mxu0 %v1816_v22 }
  0xce   : > { %1818 = vmatprep.subr.bf16.mxu0 %v2279_v0 }
  0xd1   : > { %1820 = vmatpush3.bf16.msra.mxu0 %v1819_v24 }
  0xd2   : > { %1772 = vmatprep.subr.mxu0 %v2280_v1 }
  0xd4   : > { %1750 = vmatmul.mubr.msk.f32.vlgmr.msra.gmra.mrb[2].mxu0 %vm397_vm0, %v399_v14 }
  0xd5   : > { %1774 = vmatprep.mubr.msk.f32.mxu0 %vm2281_vm1, %v2280_v1 }
 0x19e   : > { %v551_v15 = vpop.f32.mrb[0].mxu1 }
 0x19f   : > { %802 = vrot.lane.b32.xlu1 %v551_v15, %s2282_s8  ;;  %v1740_v16 = vpop.f32.mrb[1].mxu1  ;;  %1753 = vmatpush3.xpose.msk.msra.mxu1 %vm634_vm2, %v551_v15  ;;  %v476_v17 = vpop.f32.mrb[0].mxu0 }
 0x1a0   : > { %v1729_v18 = vpop.f32.mrb[1].mxu0  ;;  %1757 = vmatprep.subr.mxu1 %v2280_v1 }
 0x1a2   : > { %1755 = vmatmul.mubr.msk.f32.vlgmr.msra.gmra.mrb[2].mxu1 %vm634_vm2, %v476_v17 }
 0x1a3   : > { %800 = vrot.lane.b32.xlu1 %v476_v17, %s2282_s8  ;;  %1759 = vmatprep.mubr.msk.f32.mxu1 %vm2281_vm1, %v2280_v1 }
 0x1a7   : > { %972 = vrot.lane.b32.xlu1 %v476_v17, %s2283_s9  ;;  %v2650_v35 = vpop.f32.mrb[2].mxu0 }
 0x1a8   : > { %v1751_v36 = vpop.f32.mrb[3].mxu0  ;;  %1758 = vmatpush3.msra.mxu1 %v2650_v35 }
 0x1a9   : > { %1762 = vmatprep.subr.mxu1 %v2280_v1 }
 0x1ab   : > { %1145 = vrot.lane.b32.xlu1 %v551_v15, %s2284_s15 }
 0x1af   : > { %1143 = vrot.lane.b32.xlu1 %v476_v17, %s2284_s15 }
 0x211   : > { %v803_v37 = vpop.permute.xlu1 %802 }
 0x215   : > { %v801_v38 = vpop.permute.xlu1 %800 }
 0x219   : > { %v973_v39 = vpop.permute.xlu1 %972 }
 0x21d   : > { %v1146_v42 = vpop.permute.xlu1 %1145 }
 0x221   : > { %v1144_v44 = vpop.permute.xlu1 %1143 }
 0x275   : > { %v707_v26 = vpop.f32.mrb[2].mxu1 }
 0x276   : > { %v708_v27 = vadd.f32 %v707_v26, %v633_v25  ;;  %v1756_v28 = vpop.f32.mrb[3].mxu1 }
 0x277   : > { %v1329_v28 = vld [vmem:[#allocation11] sm:$0xff] }
 0x278   : > { %v711_v29 = vsel %vm634_vm2, %v708_v27, -inf }
 0x279   : > { %712 = vmax.xlane.f32.xlu0 %v711_v29  ;;  %v1330_v29 = vld [vmem:[#allocation11 + $0x8] sm:$0xff] }
 0x306   : > { %v713_v30 = vpop.xlane.xlu0 %712 }
 0x307   : > { %v714_v31 = vsub.f32 %v708_v27, %v713_v30  ;;  %v1822_v30 = vpack.c.bf16 %v1330_v29, %v1329_v28 }
 0x309   : > { %v715_v32 = vmul.f32 1.442695, %v714_v31  ;;  %v1331_v31 = vld [vmem:[#allocation11 + $0x10] sm:$0xff] }
 0x30b   : > { %1957 = vpow2.f32 %v715_v32  ;;  %v1332_v32 = vld [vmem:[#allocation11 + $0x18] sm:$0xff] }
 0x315   : > { %v1958_v33 = vpop.eup %1957 }
 0x316   : > { %v717_v34 = vsel %vm634_vm2, %v1958_v33, 0.0 }
 0x317   : > { %718 = vadd.xlane.f32.xlu0 %v717_v34 }
 0x32d   : > { %974 = vrot.lane.b32.xlu0 %v551_v15, %s2283_s9 }
 0x3a4   : > { %v719_v40 = vpop.xlane.xlu0 %718 }
 0x3a5   : > { %1959 = vrcp.f32 %v719_v40 }
 0x3a8   : > { %v975_v41 = vpop.permute.xlu0 %974 }
 0x3a9   : > { %1773 = vmatpush3.xpose.msk.msra.mxu0 %vm634_vm2, %v975_v41 }
 0x3aa   : > { %1782 = vmatprep.subr.mxu0 %v2280_v1 }
 0x3ac   : > { %1775 = vmatmul.mubr.msk.f32.vlgmr.msra.gmra.mrb[4].mxu0 %vm634_vm2, %v973_v39 }
 0x3ad   : > { %1783 = vmatpush3.xpose.msk.msra.mxu0 %vm634_vm2, %v1146_v42  ;;  %1784 = vmatprep.mubr.msk.f32.mxu0 %vm2281_vm1, %v2280_v1 }
 0x3ae   : > { %1821 = vmatprep.subr.bf16.mxu0 %v2279_v0 }
 0x3af   : > { %v1960_v43 = vpop.eup %1959 }
 0x3b0   : > { %v721_v45 = vmul.f32 %v1960_v43, %v1958_v33  ;;  %1785 = vmatmul.mubr.msk.f32.vlgmr.msra.gmra.mrb[6].mxu0 %vm634_vm2, %v1144_v44  ;;  %v1825_v33 = vpack.c.bf16 %v1332_v32, %v1331_v31 }
 0x3b1   : > { %1800 = vmatprep.mubr.msk.f32.mxu0 %vm2281_vm1, %v2280_v1  ;;  %1823 = vmatpush3.bf16.msra.mxu0 %v1822_v30 }
 0x3b2   : > { %722 = vst.msk [vmem:[%s2666_s12] sm:$0xff] %vm634_vm2, %v721_v45  ;;  %1760 = vmatmul.mubr.msk.f32.vlgmr.msra.gmra.mrb[4].mxu1 %vm634_vm2, %v721_v45  ;;  %1824 = vmatprep.subr.bf16.mxu0 %v2279_v0 }
 0x3b3   : > { %1763 = vmatpush3.xpose.msk.msra.mxu1 %vm634_vm2, %v803_v37  ;;  %1764 = vmatprep.mubr.msk.f32.mxu1 %vm2281_vm1, %v2280_v1 }
 0x3b4   : > { %1767 = vmatprep.subr.mxu1 %v2280_v1 }
 0x3b5   : > { %1826 = vmatpush3.bf16.msra.mxu0 %v1825_v33 }
 0x3b6   : > { %1765 = vmatmul.mubr.msk.f32.vlgmr.msra.gmra.mrb[6].mxu1 %vm634_vm2, %v801_v38 }
 0x3b7   : > { %1769 = vmatprep.mubr.msk.f32.mxu1 %vm2281_vm1, %v2280_v1 }
 0x47f   : > { %v1046_v47 = vpop.f32.mrb[4].mxu0 }
 0x480   : > { %v1047_v48 = vadd.f32 %v1664_v46, %v1046_v47  ;;  %v1776_v49 = vpop.f32.mrb[5].mxu0 }
 0x482   : > { %v1050_v50 = vsel %vm634_vm2, %v1047_v48, -inf }
 0x483   : > { %1051 = vmax.xlane.f32.xlu0 %v1050_v50  ;;  %v1217_v51 = vpop.f32.mrb[6].mxu0 }
 0x484   : > { %v1786_v52 = vpop.f32.mrb[7].mxu0  ;;  %v1218_v60 = vadd.f32 %v1669_v56, %v1217_v51 }
 0x485   : > { %v2679_v53 = vpop.f32.mrb[4].mxu1 }
 0x486   : > { %v1761_v54 = vpop.f32.mrb[5].mxu1  ;;  %v1221_v62 = vsel %vm634_vm2, %v1218_v60, -inf }
 0x489   : > { %v874_v57 = vpop.f32.mrb[6].mxu1 }
 0x48a   : > { %v875_v58 = vadd.f32 %v1659_v55, %v874_v57  ;;  %v1766_v59 = vpop.f32.mrb[7].mxu1 }
 0x48c   : > { %v878_v61 = vsel %vm634_vm2, %v875_v58, -inf }
 0x48d   : > { %879 = vmax.xlane.f32.xlu1 %v878_v61 }
 0x491   : > { %1222 = vmax.xlane.f32.xlu1 %v1221_v62 }
 0x510   : > { %v1052_v63 = vpop.xlane.xlu0 %1051 }
 0x511   : > { %v1053_v2 = vsub.f32 %v1047_v48, %v1052_v63 }
 0x513   : > { %v1054_v3 = vmul.f32 1.442695, %v1053_v2 }
 0x515   : > { %1961 = vpow2.f32 %v1054_v3 }
 0x51a   : > { %v880_v4 = vpop.xlane.xlu1 %879 }
 0x51b   : > { %v881_v12 = vsub.f32 %v875_v58, %v880_v4 }
 0x51d   : > { %v882_v13 = vmul.f32 1.442695, %v881_v12 }
 0x51e   : > { %v1223_v5 = vpop.xlane.xlu1 %1222 }
 0x51f   : > { %v1962_v6 = vpop.eup %1961  ;;  %v1224_v7 = vsub.f32 %v1218_v60, %v1223_v5 }
 0x520   : > { %v1056_v8 = vsel %vm634_vm2, %v1962_v6, 0.0 }
 0x521   : > { %v1225_v9 = vmul.f32 1.442695, %v1224_v7  ;;  %1057 = vadd.xlane.f32.xlu0 %v1056_v8 }
 0x523   : > { %1963 = vpow2.f32 %v1225_v9 }
 0x524   : > { %1965 = vpow2.f32 %v882_v13 }
 0x52d   : > { %v1964_v10 = vpop.eup %1963 }
 0x52e   : > { %v1227_v11 = vsel %vm634_vm2, %v1964_v10, 0.0  ;;  %v1966_v14 = vpop.eup %1965 }
 0x52f   : > { %1228 = vadd.xlane.f32.xlu1 %v1227_v11  ;;  %v884_v15 = vsel %vm634_vm2, %v1966_v14, 0.0 }
 0x537   : > { %892 = vrot.lane.b32.xlu0 %v2650_v35, %s2282_s8  ;;  %s1419_s8 = scalar_lea.sflag [#allocation16], %s2590_s20 }
 0x540   : > { %1063 = vrot.lane.b32.xlu1 %v2650_v35, %s2283_s9  ;;  %s2143_s9 = scalar_lea.vmem %s2719_s10, 512 }
 0x541   : > { %p2144_p6 = scmp.ne.s32.totalorder %s2719_s10, %s2143_s9 }
 0x543   : > { %p2145_p10 = pnand %p2144_p6, %p2833_p5 }
 0x545   : > { %p2146_p1 = pneg %p2145_p10 }
 0x564   : > { %885 = vadd.xlane.f32.xlu1 %v884_v15 }
 0x575   : > { %1234 = vrot.lane.b32.xlu1 %v2650_v35, %s2284_s15  ;;  %s2288_s15 = smov [#allocation15]  }
 0x576   : > { %s2147_s18 = sshll.u32 %s2288_s15, 4  ;;  %s2148_s18 = int_to_ptr.vmem [resolvable:$false] %s2147_s18 }
 0x577   : > { %p2150_p2 = scmp.lt.s32.totalorder %s2719_s10, %s2148_s18 }
 0x5ae   : > { %v1058_v16 = vpop.xlane.xlu0 %1057 }
 0x5af   : > { %1967 = vrcp.f32 %v1058_v16 }
 0x5b2   : > { %v893_v17 = vpop.permute.xlu0 %892 }
 0x5b3   : > { %1768 = vmatpush3.msra.mxu1 %v893_v17 }
 0x5b4   : > { %1777 = vmatprep.subr.mxu1 %v2280_v1 }
 0x5b9   : > { %v1968_v18 = vpop.eup %1967 }
 0x5ba   : > { %v1060_v19 = vmul.f32 %v1968_v18, %v1962_v6 }
 0x5bc   : > { %1667 = vst.msk [vmem:[%s2666_s12 + $0x10] sm:$0xff] %vm634_vm2, %v1060_v19  ;;  %v1229_v20 = vpop.xlane.xlu1 %1228 }
 0x5bd   : > { %1969 = vrcp.f32 %v1229_v20 }
 0x5c0   : > { %v1064_v23 = vpop.permute.xlu1 %1063 }
 0x5c7   : > { %v1970_v21 = vpop.eup %1969 }
 0x5c8   : > { %v1231_v22 = vmul.f32 %v1970_v21, %v1964_v10 }
 0x5ca   : > { %1672 = vst.msk [vmem:[%s2666_s12 + $0x18] sm:$0xff] %vm634_vm2, %v1231_v22 }
 0x5f1   : > { %v886_v24 = vpop.xlane.xlu1 %885 }
 0x5f2   : > { %1971 = vrcp.f32 %v886_v24 }
 0x5f5   : > { %v1235_v27 = vpop.permute.xlu1 %1234 }
 0x5fc   : > { %v1972_v25 = vpop.eup %1971 }
 0x5fd   : > { %v888_v26 = vmul.f32 %v1972_v25, %v1966_v14 }
 0x5ff   : > { %1662 = vst.msk [vmem:[%s2666_s12 + $0x8] sm:$0xff] %vm634_vm2, %v888_v26  ;;  %1770 = vmatmul.mubr.msk.f32.vlgmr.msra.gmra.mrb[8].mxu1 %vm634_vm2, %v888_v26  ;;  %s2149_s12 = scalar_lea.vmem %s2148_s18, 1024 }
 0x600   : > { %1778 = vmatpush3.msra.mxu1 %v1064_v23  ;;  %1779 = vmatprep.mubr.msk.f32.mxu1 %vm2281_vm1, %v2280_v1  ;;  %p2151_p4 = scmp.lt.s32.totalorder %s2149_s12, %s2143_s9 }
 0x601   : > { %1787 = vmatprep.subr.mxu1 %v2280_v1 }
 0x602   : > { %p2152_p9 = por %p2151_p4, %p2150_p2 }
 0x603   : > { %1780 = vmatmul.mubr.msk.f32.vlgmr.msra.gmra.mrb[10].mxu1 %vm634_vm2, %v1060_v19 }
 0x604   : > { %1788 = vmatpush3.msra.mxu1 %v1235_v27  ;;  %1789 = vmatprep.mubr.msk.f32.mxu1 %vm2281_vm1, %v2280_v1  ;;  %p2153_p8 = pnand %p2152_p9, %p2146_p1 }
 0x607   : > { %1790 = vmatmul.mubr.msk.f32.vlgmr.msra.gmra.mrb[12].mxu1 %vm634_vm2, %v1231_v22 }
 0x6d2   : > { %v964_v34 = vpop.f32.mrb[8].mxu1 }
 0x6d3   : > { %1311 = vrot.lane.b32.xlu0 %v964_v34, %s2285_s1  ;;  %v1771_v35 = vpop.f32.mrb[9].mxu1 }
 0x6d6   : > { %v1135_v36 = vpop.f32.mrb[10].mxu1 }
 0x6d7   : > { %1315 = vrot.lane.b32.xlu1 %v1135_v36, %s2286_s17  ;;  %v1781_v1 = vpop.f32.mrb[11].mxu1 }
 0x6da   : > { %v1306_v37 = vpop.f32.mrb[12].mxu1 }
 0x6db   : > { %1319 = vrot.lane.b32.xlu0 %v1306_v37, %s2287_s23  ;;  %v1791_v0 = vpop.f32.mrb[13].mxu1 }
 0x745   : > { %v1312_v38 = vpop.permute.xlu0 %1311 }
 0x746   : > { %v1322_v40 = vsel %vm634_vm2, %v2679_v53, %v1312_v38 }
 0x749   : > { %v1316_v39 = vpop.permute.xlu1 %1315 }
 0x74a   : > { %v1324_v41 = vsel %vm1323_vm3, %v1322_v40, %v1316_v39 }
 0x74d   : > { %v1320_v42 = vpop.permute.xlu0 %1319 }
 0x74e   : > { %v1326_v43 = vsel %vm1325_vm4, %v1324_v41, %v1320_v42 }
 0x74f   : > { %1801 = vmatmul.mubr.msk.f32.vlgmr.msra.gmra.mrb[8].mxu0 %vm397_vm0, %v1326_v43 }
 0x750   : > { %2156 = shalt.err (!%p2153_p8)
}
 0x751   : > { %s2157_s17 = scalar_lea.hbm %s2717_s14, 512  ;;  %s2161_s13 = scalar_lea.hbm %s2810_s7, 1024 }
 0x752   : > { %p2158_p3 = scmp.ne.s32.totalorder %s2717_s14, %s2157_s17  ;;  %p2162_p0 = scmp.lt.u32.totalorder %s2717_s14, %s2810_s7 }
 0x753   : > { %p2163_p11 = scmp.lt.u32.totalorder %s2161_s13, %s2157_s17  ;;  %p2165_p6 = scmp.lt.u32.totalorder %s2157_s17, %s2717_s14 }
 0x754   : > { %p2159_p12 = pnand %p2158_p3, %p2833_p5 }
 0x755   : > { %p2164_p7 = por %p2163_p11, %p2162_p0 }
 0x756   : > { %p2160_p13 = pneg %p2159_p12 }
 0x757   : > { %p2166_p10 = por %p2165_p6, %p2164_p7 }
 0x759   : > { %p2167_p1 = pnand %p2166_p10, %p2160_p13 }
 0x75b   : > { %2170 = shalt.err (!%p2167_p1)
}
 0x75c   : > { %s2289_s9 = smov 128   ;;  %v1327_v44 = vld [vmem:[#allocation2] sm:$0xff]  ;;  %s1677_s18 = sshll.u32 %s2261_s27, 7 }
 0x75d   : > { %1850 = dma.vmem_to_hbm [thread:$0]  (%p2833_p5), %s2719_s10, 512, %s2717_s14, %s1419_s8, %s2289_s9, %s2289_s9, %s2285_s1  }
 0x75e   : > { %s384_s12 = scalar_lea.vmem [#allocation14], %s1645_s11  ;;  %s2834_s13 = sld [smem:[#allocation24_spill]] }
 0x75f   : > { %s1432_s17 = sshll.u32 %s384_s12, 4  ;;  %s1414_s1 = scalar_lea.sflag [#allocation5], %s2590_s20  ;;  %s2755_s17 = int_to_ptr.vmem [resolvable:$true] %s1432_s17 }
 0x760   : > { %s2171_s10 = scalar_lea.vmem %s2755_s17, 128  ;;  %s2290_s27 = smov [#allocation14]  }
 0x761   : > { %p2172_p2 = scmp.ne.s32.totalorder %s2755_s17, %s2171_s10  ;;  %s2175_s11 = sshll.u32 %s2290_s27, 4  ;;  %s2176_s11 = int_to_ptr.vmem [resolvable:$false] %s2175_s11 }
 0x762   : > { %s2177_s14 = scalar_lea.vmem %s2176_s11, 256  ;;  %p2178_p8 = scmp.lt.s32.totalorder %s2755_s17, %s2176_s11 }
 0x763   : > { %p2173_p4 = pnand %p2172_p2, %p2833_p5  ;;  %p2179_p3 = scmp.lt.s32.totalorder %s2177_s14, %s2171_s10 }
 0x764   : > { %s2753_s6 = scalar_lea.hbm %s2834_s13, %s1677_s18 }
 0x765   : > { %p2174_p9 = pneg %p2173_p4  ;;  %p2180_p12 = por %p2179_p3, %p2178_p8 }
 0x767   : > { %p2181_p13 = pnand %p2180_p12, %p2174_p9 }
 0x822   : > { %v1402_v45 = vpop.f32.mrb[8].mxu0 }
 0x823   : > { %v1406_v46 = vadd.f32 %v1402_v45, %v1327_v44  ;;  %v1802_v47 = vpop.f32.mrb[9].mxu0 }
 0x825   : > { %1407 = vst.msk [vmem:[#allocation2] sm:$0xff] %vm397_vm0, %v1406_v46 }
 0x82c   : > { %v1411_v48 = vld [vmem:[#allocation2] sm:$0xff] }
 0x82d   : > { %1412 = vst.msk [vmem:[%s384_s12] sm:$0xff] %vm397_vm0, %v1411_v48 }
 0x82e   : > { %2184 = shalt.err (!%p2181_p13)
}
 0x82f   : > { %s2185_s20 = scalar_lea.hbm %s2753_s6, 128  ;;  %s2189_s9 = scalar_lea.hbm %s2834_s13, 256 }
 0x830   : > { %p2186_p0 = scmp.ne.s32.totalorder %s2753_s6, %s2185_s20  ;;  %p2190_p6 = scmp.lt.u32.totalorder %s2753_s6, %s2834_s13 }
 0x831   : > { %p2191_p10 = scmp.lt.u32.totalorder %s2189_s9, %s2185_s20  ;;  %p2193_p2 = scmp.lt.u32.totalorder %s2185_s20, %s2753_s6 }
 0x832   : > { %p2187_p11 = pnand %p2186_p0, %p2833_p5 }
 0x833   : > { %p2192_p1 = por %p2191_p10, %p2190_p6 }
 0x834   : > { %p2188_p7 = pneg %p2187_p11 }
 0x835   : > { %p2194_p4 = por %p2193_p2, %p2192_p1 }
 0x837   : > { %p2195_p9 = pnand %p2194_p4, %p2188_p7 }
 0x839   : > { %2198 = shalt.err (!%p2195_p9)
}
 0x83a   : > { %1849 = dma.vmem_to_hbm [thread:$0]  (%p2833_p5), %s2755_s17, 128, %s2753_s6, %s1414_s1  }
 0x83b PF: > { %s1462_s23 = sand.u32 1, %s2249_s24   ;;  %p2835_p8 = scmp.ne.s32.totalorder %s2829_s21, 0 }
 0x83c   : > { %p2836_p3 = scmp.ge.s32.totalorder %s2269_s29, 2  ;;  %s1463_s16 = scalar_lea.sflag [#allocation5], %s1462_s23 }
 0x83e   : > { %p1874_p12 = pnand %p2836_p3, %p2835_p8 }
 0x840   : > { %2240 = dma.done.wait (!%p1874_p12), %s1463_s16, 128  }
 0x841   : > { %2242 = vsyncadd (!%p1874_p12), %s1463_s16, 4294967168  ;;  %s1472_s10 = scalar_lea.sflag [#allocation16], %s1462_s23 }
 0x842   : > { %2244 = dma.done.wait (!%p1874_p12), %s1472_s10, 512  }
 0x843   : > { %2246 = vsyncadd (!%p1874_p12), %s1472_s10, 4294966784  ;;  %s30_s29 = sadd.s32 1, %s2269_s29   ;;  %s2837_s24 = smov %s2253_s25 }
 0x844   : > { %p27_p13 = scmp.ge.s32.totalorder %s30_s29, 4   ;;  %s2838_s25 = smov %s2257_s26 }
 0x845   : > { %s2839_s26 = smov %s2541_s19  ;;  %s2840_s27 = smov %s2265_s28 }
 0x846   : > { %s2841_s28 = smov %s2843_s22  ;;  %29 = sbr.rel (!%p27_p13) target bundleno = 14 (0xe), region = 145 }
 0x84d   :  { %1477 = vsyncpa [#allocation4], 1 }
 0x84e   :  { %1479 = vsyncpa [#allocation4 + $0x1], 1 }
 0x84f   :  { %1480 = vsyncpa [#allocation7], 1 }
 0x850   :  { %1481 = vsyncpa [#allocation10], 1 }
 0x851   :  { %1482 = vsyncpa [#allocation13], 1 }
 0x852   :  { %1483 = vsyncpa [#allocation5], 1 }
 0x853   :  { %1485 = vsyncpa [#allocation5 + $0x1], 1 }
 0x854   :  { %1486 = vsyncpa [#allocation16], 1 }
 0x855   :  { %1488 = vsyncpa [#allocation16 + $0x1], 1 }

</bundles_post_ra>
